<compile_context>
chip_gen: v6e
topology: v6e:2x2x1
jax: 0.10.0
libtpu: 0.0.40
codegen_flags: <defaults>
</compile_context>

<pallas_src>
import functools

import jax
import jax.numpy as jnp
from jax.experimental import pallas as pl
from jax.experimental.pallas import tpu as pltpu


def _round_up(v, m):
    return (v + m - 1) // m * m


def _ce_kernel(x_ref, wt_ref, b_ref, y_ref, nll_ref, *, n_cols, n_cols_padded):
    """One batch tile: logits = x @ Wt + b ; nll[r] = logsumexp(logits[r]) - logits[r, y[r]]."""
    # Clean [M,K]x[K,N] MXU path (W pre-transposed in the wrapper, outside the grid loop).
    logits = jnp.dot(x_ref[...], wt_ref[...],
                     preferred_element_type=jnp.float32) + b_ref[...]        # (TB, HP) f32

    cols = jax.lax.broadcasted_iota(jnp.int32, logits.shape, 1)
    if n_cols_padded != n_cols:           # static: skipped entirely for lane-aligned H
        logits = jnp.where(cols < n_cols, logits, jnp.float32(-1e30))

    # Numerically stable logsumexp (exp / log run on the EUP).
    m = jnp.max(logits, axis=-1, keepdims=True)                               # (TB, 1)
    lse = m + jnp.log(jnp.sum(jnp.exp(logits - m), axis=-1, keepdims=True))   # (TB, 1)

    # Gather logits[r, y[r]] via iota compare + masked reduce (reuses `cols`).
    y = y_ref[...]                                                            # (TB, 1) int32
    tgt = jnp.sum(jnp.where(cols == y, logits, 0.0), axis=-1, keepdims=True)  # (TB, 1)

    # Per-example NLL.  Rows beyond the true batch (ragged last tile) are dropped by
    # Pallas' masked output store, so no explicit row mask is required.
    nll_ref[...] = lse - tgt


def _select_tile_b(batch, hp, x_itemsize, sub, budget_bytes):
    tb = min(_round_up(batch, sub), 512)

    def vmem_need(t):
        return (hp * hp * x_itemsize          # resident W (single-buffered)
                + 8 * hp * 4                  # resident bias (sublane-padded)
                + 2 * t * hp * x_itemsize     # double-buffered x tiles
                + 2 * t * 128 * 4             # y tiles (lane-padded)
                + 2 * t * 128 * 4)            # per-example output tiles

    while tb > sub and vmem_need(tb) > budget_bytes:
        tb = max(_round_up(tb // 2, sub), sub)
    return tb


def curriculum_simple_model_forward(x, w, b, y, *, compute_dtype=jnp.float32, **kwargs):
    """JAX/Pallas equivalent of Curriculum_SimpleModel.forward(x, y, **kwargs)."""
    seqlen = kwargs.get("curriculum_seqlen", None)

    B, H = x.shape
    itemsize = jnp.dtype(compute_dtype).itemsize
    sub = 8 if itemsize == 4 else 16             # sublane tile for the compute dtype
    HP = _round_up(H, 128)                       # lane-dense classes / contraction dim
    # TODO(synk): for HP*HP*itemsize beyond ~40 MiB (very large hidden dims) a class-dim
    # grid axis with streaming logsumexp would be needed; not required at these sizes.
    TB = _select_tile_b(B, HP, itemsize, sub, budget_bytes=40 << 20)
    n_tiles = pl.cdiv(B, TB)

    # One-time wrapper-side prep (outside the grid loop):
    #   * W -> [in, out] so the kernel is a plain NN matmul (no in-loop transpose).
    #   * x is only copied (zero K-pad) when H is not lane-aligned; the batch dim is
    #     never padded -- Pallas masks the ragged last tile's output store.
    wt = w.T.astype(compute_dtype)
    bp = b.reshape(1, H).astype(jnp.float32)
    xp = x.astype(compute_dtype)
    if HP != H:
        pad_c = HP - H
        wt = jnp.pad(wt, ((0, pad_c), (0, pad_c)))
        bp = jnp.pad(bp, ((0, 0), (0, pad_c)))
        xp = jnp.pad(xp, ((0, 0), (0, pad_c)))   # zero K-pad keeps the contraction exact
    yp = y.reshape(B, 1).astype(jnp.int32)

    kernel = functools.partial(_ce_kernel, n_cols=H, n_cols_padded=HP)

    # Explicit scoped-VMEM request sized from the actual buffers (conservatively assumes
    # a double-buffered W); the 16/32 MiB defaults are hit long before physical VMEM.
    vmem_need = (2 * HP * HP * itemsize + 2 * 8 * HP * 4
                 + 2 * TB * HP * itemsize + 4 * TB * 128 * 4)
    vmem_limit = int(min(max(vmem_need + (8 << 20), 32 << 20), 120 << 20))

    cost = pl.CostEstimate(
        flops=2 * B * HP * HP + 6 * B * HP,
        transcendentals=B * HP + B,
        bytes_accessed=(B * HP + HP * HP) * itemsize + HP * 4 + B * 4 + B * 4)

    def build_and_run(single_buffer_resident):
        res_kw = dict(pipeline_mode=pl.Buffered(1)) if single_buffer_resident else {}
        return pl.pallas_call(
            kernel,
            out_shape=jax.ShapeDtypeStruct((B, 1), jnp.float32),
            grid_spec=pltpu.PrefetchScalarGridSpec(
                num_scalar_prefetch=0,
                grid=(n_tiles,),
                in_specs=[
                    pl.BlockSpec((TB, HP), lambda i: (i, 0)),            # x: streamed per tile
                    pl.BlockSpec((HP, HP), lambda i: (0, 0), **res_kw),  # W.T: VMEM-resident
                    pl.BlockSpec((1, HP), lambda i: (0, 0), **res_kw),   # bias: resident
                    pl.BlockSpec((TB, 1), lambda i: (i, 0)),             # y: per-tile class ids
                ],
                out_specs=pl.BlockSpec((TB, 1), lambda i: (i, 0)),       # per-example NLL
            ),
            compiler_params=pltpu.CompilerParams(
                dimension_semantics=("parallel",),   # independent tiles -> megacore-splittable
                vmem_limit_bytes=vmem_limit),
            cost_estimate=cost,
        )(xp, wt, bp, yp)

    try:
        nll = build_and_run(True)     # single-buffer the grid-invariant W / bias
    except Exception:                 # fall back if pl.Buffered(1) is rejected by this build
        nll = build_and_run(False)

    loss = jnp.sum(nll) * jnp.float32(1.0 / B)
    return loss, seqlen


def _reference_forward(x, w, b, y):
    logits = x @ w.T + b
    logp = jax.nn.log_softmax(logits, axis=-1)
    nll = -jnp.take_along_axis(logp, y[:, None].astype(jnp.int32), axis=-1)[:, 0]
    return jnp.mean(nll)


if __name__ == "__main__":
    key = jax.random.PRNGKey(0)
    k_x, k_y, k_w, k_b = jax.random.split(key, 4)

    batch = 8
    hidden_dim = 32

    # Deterministic init mimicking torch.nn.Linear default (uniform +-1/sqrt(H)).
    bound = 1.0 / (hidden_dim ** 0.5)
    w = jax.random.uniform(k_w, (hidden_dim, hidden_dim),
                           minval=-bound, maxval=bound, dtype=jnp.float32)
    b = jax.random.uniform(k_b, (hidden_dim,),
                           minval=-bound, maxval=bound, dtype=jnp.float32)
    x = jax.random.normal(k_x, (batch, hidden_dim), dtype=jnp.float32)
    y = jax.random.randint(k_y, (batch,), 0, hidden_dim, dtype=jnp.int32)

    loss, seqlen = curriculum_simple_model_forward(
        x, w, b, y, curriculum_seqlen=hidden_dim)
    loss = jax.block_until_ready(loss)

    ref = _reference_forward(x, w, b, y)
    assert jnp.allclose(loss, ref, atol=1e-5, rtol=1e-5), (loss, ref)
    assert seqlen == hidden_dim

    # Check 2: ragged hidden dim (exercises class-padding mask) + non-pow2 batch.
    k_x2, k_y2 = jax.random.split(k_x)
    B2, H2 = 136, 200
    bound2 = 1.0 / (H2 ** 0.5)
    w2 = jax.random.uniform(k_w, (H2, H2), minval=-bound2, maxval=bound2, dtype=jnp.float32)
    b2 = jax.random.uniform(k_b, (H2,), minval=-bound2, maxval=bound2, dtype=jnp.float32)
    x2 = jax.random.normal(k_x2, (B2, H2), dtype=jnp.float32)
    y2 = jax.random.randint(k_y2, (B2,), 0, H2, dtype=jnp.int32)

    loss2, _ = curriculum_simple_model_forward(x2, w2, b2, y2, curriculum_seqlen=H2)
    loss2 = jax.block_until_ready(loss2)
    ref2 = _reference_forward(x2, w2, b2, y2)
    assert jnp.allclose(loss2, ref2, atol=2e-5, rtol=2e-5), (loss2, ref2)

    # Check 3: lane-aligned H (no padding, no class mask), multi-tile batch grid with a
    # ragged final tile (exercises the parallel streamed path and masked output store).
    k_x3, k_y3 = jax.random.split(k_y)
    B3, H3 = 1030, 128
    bound3 = 1.0 / (H3 ** 0.5)
    w3 = jax.random.uniform(k_w, (H3, H3), minval=-bound3, maxval=bound3, dtype=jnp.float32)
    b3 = jax.random.uniform(k_b, (H3,), minval=-bound3, maxval=bound3, dtype=jnp.float32)
    x3 = jax.random.normal(k_x3, (B3, H3), dtype=jnp.float32)
    y3 = jax.random.randint(k_y3, (B3,), 0, H3, dtype=jnp.int32)

    loss3, _ = curriculum_simple_model_forward(x3, w3, b3, y3, curriculum_seqlen=H3)
    loss3 = jax.block_until_ready(loss3)
    ref3 = _reference_forward(x3, w3, b3, y3)
    assert jnp.allclose(loss3, ref3, atol=2e-5, rtol=2e-5), (loss3, ref3)

    print("KERNEL_OK")
</pallas_src>

<mosaic_0001>
module attributes {stable_mosaic.version = 11 : i64} {
  func.func @_ce_kernel(%arg0: i32, %arg1: memref<8x128xf32, #tpu.memory_space<vmem>>, %arg2: memref<128x128xf32, #tpu.memory_space<vmem>>, %arg3: memref<1x128xf32, #tpu.memory_space<vmem>>, %arg4: memref<8x1xi32, #tpu.memory_space<vmem>>, %arg5: memref<8x1xf32, #tpu.memory_space<vmem>>) attributes {dimension_semantics = [#tpu.dimension_semantics<parallel>], iteration_bounds = array<i64: 1>, scalar_prefetch = 0 : i64, scratch_operands = 0 : i64, tpu.core_type = #tpu.core_type<tc>, window_params = [{transform_indices = @transform_0, window_bounds = array<i64: 8, 128>}, {pipeline_mode = #tpu.pipeline_mode<synchronous>, transform_indices = @transform_1, window_bounds = array<i64: 128, 128>}, {pipeline_mode = #tpu.pipeline_mode<synchronous>, transform_indices = @transform_2, window_bounds = array<i64: 1, 128>}, {transform_indices = @transform_3, window_bounds = array<i64: 8, 1>}, {transform_indices = @transform_4, window_bounds = array<i64: 8, 1>}]} {
    %c0 = arith.constant 0 : index
    %c0_0 = arith.constant 0 : index
    %0 = vector.load %arg1[%c0, %c0_0] : memref<8x128xf32, #tpu.memory_space<vmem>>, vector<8x128xf32>
    %c0_1 = arith.constant 0 : index
    %c0_2 = arith.constant 0 : index
    %1 = vector.load %arg2[%c0_1, %c0_2] : memref<128x128xf32, #tpu.memory_space<vmem>>, vector<128x128xf32>
    %cst = arith.constant dense<0.000000e+00> : vector<8x128xf32>
    %2 = tpu.matmul %0, %1, %cst {dimension_numbers = #tpu.dot_dimension_numbers<[1], [0], [0], [1], [0, 0, 1, 1], [], []>} : vector<8x128xf32>, vector<128x128xf32>, vector<8x128xf32> -> vector<8x128xf32>
    %c0_3 = arith.constant 0 : index
    %c0_4 = arith.constant 0 : index
    %3 = vector.load %arg3[%c0_3, %c0_4] : memref<1x128xf32, #tpu.memory_space<vmem>>, vector<1x128xf32>
    %4 = vector.broadcast %3 : vector<1x128xf32> to vector<8x128xf32>
    %5 = arith.addf %2, %4 : vector<8x128xf32>
    %6 = tpu.iota {dimensions = array<i32: 1>} : vector<8x128xi32>
    %c32_i32 = arith.constant 32 : i32
    %7 = vector.broadcast %c32_i32 : i32 to vector<8x128xi32>
    %8 = arith.cmpi slt, %6, %7 : vector<8x128xi32>
    %cst_5 = arith.constant -1.000000e+30 : f32
    %9 = vector.broadcast %cst_5 : f32 to vector<8x128xf32>
    %10 = arith.select %8, %5, %9 : vector<8x128xi1>, vector<8x128xf32>
    %cst_6 = arith.constant dense<0xFF800000> : vector<8xf32>
    %11 = vector.multi_reduction <maximumf>, %10, %cst_6 [1] : vector<8x128xf32> to vector<8xf32>
    %12 = vector.shape_cast %11 : vector<8xf32> to vector<8x1xf32>
    %13 = vector.broadcast %12 : vector<8x1xf32> to vector<8x128xf32>
    %14 = arith.subf %10, %13 : vector<8x128xf32>
    %15 = math.exp %14 : vector<8x128xf32>
    %cst_7 = arith.constant dense<0.000000e+00> : vector<8xf32>
    %16 = vector.multi_reduction <add>, %15, %cst_7 [1] : vector<8x128xf32> to vector<8xf32>
    %17 = vector.shape_cast %16 : vector<8xf32> to vector<8x1xf32>
    %18 = math.log %17 : vector<8x1xf32>
    %19 = arith.addf %12, %18 : vector<8x1xf32>
    %c0_8 = arith.constant 0 : index
    %c0_9 = arith.constant 0 : index
    %20 = vector.load %arg4[%c0_8, %c0_9] : memref<8x1xi32, #tpu.memory_space<vmem>>, vector<8x1xi32>
    %21 = vector.broadcast %20 : vector<8x1xi32> to vector<8x128xi32>
    %22 = arith.cmpi eq, %6, %21 : vector<8x128xi32>
    %cst_10 = arith.constant 0.000000e+00 : f32
    %23 = vector.broadcast %cst_10 : f32 to vector<8x128xf32>
    %24 = arith.select %22, %10, %23 : vector<8x128xi1>, vector<8x128xf32>
    %cst_11 = arith.constant dense<0.000000e+00> : vector<8xf32>
    %25 = vector.multi_reduction <add>, %24, %cst_11 [1] : vector<8x128xf32> to vector<8xf32>
    %26 = vector.shape_cast %25 : vector<8xf32> to vector<8x1xf32>
    %27 = arith.subf %19, %26 : vector<8x1xf32>
    %c0_12 = arith.constant 0 : index
    %c0_13 = arith.constant 0 : index
    %28 = vector.load %arg5[%c0_12, %c0_13] : memref<8x1xf32, #tpu.memory_space<vmem>>, vector<8x1xf32>
    tpu.vector_store %arg5[%c0_12, %c0_13], %27 {strides = array<i32>} : memref<8x1xf32, #tpu.memory_space<vmem>>, vector<8x1xf32>,
    return
  }
  func.func @transform_0(%arg0: i32) -> (i32, i32) {
    %c0_i32 = arith.constant 0 : i32
    %c0_i32_0 = arith.constant 0 : i32
    return %arg0, %c0_i32 : i32, i32
  }
  func.func @transform_1(%arg0: i32) -> (i32, i32) {
    %c0_i32 = arith.constant 0 : i32
    %c0_i32_0 = arith.constant 0 : i32
    %c0_i32_1 = arith.constant 0 : i32
    return %c0_i32, %c0_i32_0 : i32, i32
  }
  func.func @transform_2(%arg0: i32) -> (i32, i32) {
    %c0_i32 = arith.constant 0 : i32
    %c0_i32_0 = arith.constant 0 : i32
    %c0_i32_1 = arith.constant 0 : i32
    return %c0_i32, %c0_i32_0 : i32, i32
  }
  func.func @transform_3(%arg0: i32) -> (i32, i32) {
    %c0_i32 = arith.constant 0 : i32
    %c0_i32_0 = arith.constant 0 : i32
    return %arg0, %c0_i32 : i32, i32
  }
  func.func @transform_4(%arg0: i32) -> (i32, i32) {
    %c0_i32 = arith.constant 0 : i32
    %c0_i32_0 = arith.constant 0 : i32
    return %arg0, %c0_i32 : i32, i32
  }
}

module attributes {stable_mosaic.version = 11 : i64} {
  func.func @_ce_kernel(%arg0: i32, %arg1: memref<8x128xf32, #tpu.memory_space<vmem>>, %arg2: memref<128x128xf32, #tpu.memory_space<vmem>>, %arg3: memref<1x128xf32, #tpu.memory_space<vmem>>, %arg4: memref<8x1xi32, #tpu.memory_space<vmem>>, %arg5: memref<8x1xf32, #tpu.memory_space<vmem>>) attributes {dimension_semantics = [#tpu.dimension_semantics<parallel>], iteration_bounds = array<i64: 1>, scalar_prefetch = 0 : i64, scratch_operands = 0 : i64, tpu.core_type = #tpu.core_type<tc>, window_params = [{transform_indices = @transform_0, window_bounds = array<i64: 8, 128>}, {pipeline_mode = #tpu.pipeline_mode<synchronous>, transform_indices = @transform_1, window_bounds = array<i64: 128, 128>}, {pipeline_mode = #tpu.pipeline_mode<synchronous>, transform_indices = @transform_2, window_bounds = array<i64: 1, 128>}, {transform_indices = @transform_3, window_bounds = array<i64: 8, 1>}, {transform_indices = @transform_4, window_bounds = array<i64: 8, 1>}]} {
    %c0 = arith.constant 0 : index
    %c0_0 = arith.constant 0 : index
    %0 = vector.load %arg1[%c0, %c0_0] : memref<8x128xf32, #tpu.memory_space<vmem>>, vector<8x128xf32>
    %c0_1 = arith.constant 0 : index
    %c0_2 = arith.constant 0 : index
    %1 = vector.load %arg2[%c0_1, %c0_2] : memref<128x128xf32, #tpu.memory_space<vmem>>, vector<128x128xf32>
    %cst = arith.constant dense<0.000000e+00> : vector<8x128xf32>
    %2 = tpu.matmul %0, %1, %cst {dimension_numbers = #tpu.dot_dimension_numbers<[1], [0], [0], [1], [0, 0, 1, 1], [], []>} : vector<8x128xf32>, vector<128x128xf32>, vector<8x128xf32> -> vector<8x128xf32>
    %c0_3 = arith.constant 0 : index
    %c0_4 = arith.constant 0 : index
    %3 = vector.load %arg3[%c0_3, %c0_4] : memref<1x128xf32, #tpu.memory_space<vmem>>, vector<1x128xf32>
    %4 = vector.broadcast %3 : vector<1x128xf32> to vector<8x128xf32>
    %5 = arith.addf %2, %4 : vector<8x128xf32>
    %6 = tpu.iota {dimensions = array<i32: 1>} : vector<8x128xi32>
    %c32_i32 = arith.constant 32 : i32
    %7 = vector.broadcast %c32_i32 : i32 to vector<8x128xi32>
    %8 = arith.cmpi slt, %6, %7 : vector<8x128xi32>
    %cst_5 = arith.constant -1.000000e+30 : f32
    %9 = vector.broadcast %cst_5 : f32 to vector<8x128xf32>
    %10 = arith.select %8, %5, %9 : vector<8x128xi1>, vector<8x128xf32>
    %cst_6 = arith.constant dense<0xFF800000> : vector<8xf32>
    %11 = vector.multi_reduction <maximumf>, %10, %cst_6 [1] : vector<8x128xf32> to vector<8xf32>
    %12 = vector.shape_cast %11 : vector<8xf32> to vector<8x1xf32>
    %13 = vector.broadcast %12 : vector<8x1xf32> to vector<8x128xf32>
    %14 = arith.subf %10, %13 : vector<8x128xf32>
    %15 = math.exp %14 : vector<8x128xf32>
    %cst_7 = arith.constant dense<0.000000e+00> : vector<8xf32>
    %16 = vector.multi_reduction <add>, %15, %cst_7 [1] : vector<8x128xf32> to vector<8xf32>
    %17 = vector.shape_cast %16 : vector<8xf32> to vector<8x1xf32>
    %18 = math.log %17 : vector<8x1xf32>
    %19 = arith.addf %12, %18 : vector<8x1xf32>
    %c0_8 = arith.constant 0 : index
    %c0_9 = arith.constant 0 : index
    %20 = vector.load %arg4[%c0_8, %c0_9] : memref<8x1xi32, #tpu.memory_space<vmem>>, vector<8x1xi32>
    %21 = vector.broadcast %20 : vector<8x1xi32> to vector<8x128xi32>
    %22 = arith.cmpi eq, %6, %21 : vector<8x128xi32>
    %cst_10 = arith.constant 0.000000e+00 : f32
    %23 = vector.broadcast %cst_10 : f32 to vector<8x128xf32>
    %24 = arith.select %22, %10, %23 : vector<8x128xi1>, vector<8x128xf32>
    %cst_11 = arith.constant dense<0.000000e+00> : vector<8xf32>
    %25 = vector.multi_reduction <add>, %24, %cst_11 [1] : vector<8x128xf32> to vector<8xf32>
    %26 = vector.shape_cast %25 : vector<8xf32> to vector<8x1xf32>
    %27 = arith.subf %19, %26 : vector<8x1xf32>
    %c0_12 = arith.constant 0 : index
    %c0_13 = arith.constant 0 : index
    %28 = vector.load %arg5[%c0_12, %c0_13] : memref<8x1xf32, #tpu.memory_space<vmem>>, vector<8x1xf32>
    tpu.vector_store %arg5[%c0_12, %c0_13], %27 {strides = array<i32>} : memref<8x1xf32, #tpu.memory_space<vmem>>, vector<8x1xf32>,
    return
  }
  func.func @transform_0(%arg0: i32) -> (i32, i32) {
    %c0_i32 = arith.constant 0 : i32
    %c0_i32_0 = arith.constant 0 : i32
    return %arg0, %c0_i32 : i32, i32
  }
  func.func @transform_1(%arg0: i32) -> (i32, i32) {
    %c0_i32 = arith.constant 0 : i32
    %c0_i32_0 = arith.constant 0 : i32
    %c0_i32_1 = arith.constant 0 : i32
    return %c0_i32, %c0_i32_0 : i32, i32
  }
  func.func @transform_2(%arg0: i32) -> (i32, i32) {
    %c0_i32 = arith.constant 0 : i32
    %c0_i32_0 = arith.constant 0 : i32
    %c0_i32_1 = arith.constant 0 : i32
    return %c0_i32, %c0_i32_0 : i32, i32
  }
  func.func @transform_3(%arg0: i32) -> (i32, i32) {
    %c0_i32 = arith.constant 0 : i32
    %c0_i32_0 = arith.constant 0 : i32
    return %arg0, %c0_i32 : i32, i32
  }
  func.func @transform_4(%arg0: i32) -> (i32, i32) {
    %c0_i32 = arith.constant 0 : i32
    %c0_i32_0 = arith.constant 0 : i32
    return %arg0, %c0_i32 : i32, i32
  }
}

</mosaic_0001>

<bundles_post_ra>
// kernel: tpu_custom_call.1
= control target key start
LH: loop header
LB: loop body
LE: loop exit
PB: predicated region body
PF: predicated region fallthrough
CT: control target
= control target key end

     0   :  { %9 = vsyncpa [#allocation3], 0  ;;  %s241_s15 = smov [#allocation2]   ;;  %s287_s0 = inlined_call_operand.vmem [shape: f32[8,128], index: 0, kind: input, shape index: {}]   ;;  %s288_s1 = inlined_call_operand.hbm [shape: f32[128,128], index: 1, kind: input, shape index: {}]   ;;  %s289_s2 = inlined_call_operand.vmem [shape: f32[1,128], index: 2, kind: input, shape index: {}]   ;;  %s290_s3 = inlined_call_operand.vmem [shape: s32[8,1], index: 3, kind: input, shape index: {}]   ;;  %s291_s4 = inlined_call_operand.vmem [shape: f32[8,1], index: 4, kind: output, shape index: {}]  }
   0x1   :  { %s17_s16 = sshll.u32 %s241_s15, 4  ;;  %s18_s16 = int_to_ptr.vmem [resolvable:$true] %s17_s16 }
   0x2   :  { %s227_s17 = scalar_lea.vmem %s18_s16, 2048  ;;  %p232_p1 = scmp.lt.s32.totalorder %s18_s16, %s18_s16 }
   0x3   :  { %p228_p0 = scmp.ne.s32.totalorder %s18_s16, %s227_s17  ;;  %p233_p2 = scmp.lt.s32.totalorder %s227_s17, %s227_s17 }
   0x5   :  { %p234_p3 = por %p233_p2, %p232_p1 }
   0x7   :  { %p235_p4 = pnand %p234_p3, %p228_p0 }
   0x9   :  { %238 = shalt.err (!%p235_p4)
}
   0xa   :  { %s242_s18 = smov 128   ;;  %s243_s19 = smov 8  }
   0xb   :  { %23 = dma.hbm_to_vmem [thread:$0]  %s288_s1, 2048, %s18_s16, [#allocation3], %s242_s18, %s242_s18, %s243_s19  }
   0xc   :  { %239 = dma.done.wait [#allocation3], 2048  }
   0xd   :  { %240 = vsyncadd [#allocation3], 4294965248  ;;  %v244_v0 = vmov 0.0   ;;  %vm245_vm0 = vmmov 0   ;;  %v47_v1 = vld [vmem:[#allocation2 + $0x78] sm:$0xff]  ;;  %v46_v2 = vld [vmem:[#allocation2 + $0x70] sm:$0xff]  ;;  %v125_v19 = vlaneseq }
   0xe   :  { %173 = vmatprep.subr.mxu0 %v244_v0  ;;  %205 = vmatprep.mubr.msk.f32.mxu0 %vm245_vm0, %v244_v0  ;;  %v45_v3 = vld [vmem:[#allocation2 + $0x68] sm:$0xff]  ;;  %v44_v4 = vld [vmem:[#allocation2 + $0x60] sm:$0xff]  ;;  %v43_v5 = vld [vmem:[#allocation2 + $0x58] sm:$0xff]  ;;  %v246_v18 = vmov 0   ;;  %vm148_vm3 = vcmask 7168  }
   0xf   :  { %174 = vmatpush3.msra.mxu0 %v47_v1  ;;  %v42_v6 = vld [vmem:[#allocation2 + $0x50] sm:$0xff]  ;;  %v41_v7 = vld [vmem:[#allocation2 + $0x48] sm:$0xff]  ;;  %v40_v8 = vld [vmem:[#allocation2 + $0x40] sm:$0xff]  ;;  %214 = vset.pattern.permute.xlu0 %v246_v18  ;;  %v126_v20 = vand.u32 127, %v125_v19 }
  0x10   :  { %175 = vmatprep.subr.mxu0 %v244_v0  ;;  %v39_v9 = vld [vmem:[#allocation2 + $0x38] sm:$0xff]  ;;  %v38_v10 = vld [vmem:[#allocation2 + $0x30] sm:$0xff]  ;;  %v37_v11 = vld [vmem:[#allocation2 + $0x28] sm:$0xff] }
  0x11   :  { %176 = vmatpush3.msra.mxu0 %v46_v2  ;;  %v36_v12 = vld [vmem:[#allocation2 + $0x20] sm:$0xff]  ;;  %v35_v13 = vld [vmem:[#allocation2 + $0x18] sm:$0xff]  ;;  %v34_v14 = vld [vmem:[#allocation2 + $0x10] sm:$0xff]  ;;  %vm127_vm1 = vcmp.lt.s32.totalorder %v126_v20, 32 }
  0x12   :  { %177 = vmatprep.subr.mxu0 %v244_v0  ;;  %v33_v15 = vld [vmem:[#allocation2 + $0x8] sm:$0xff]  ;;  %v32_v16 = vld [vmem:[#allocation2] sm:$0xff] }
  0x13   :  { %178 = vmatpush3.msra.mxu0 %v45_v3  ;;  %v31_v17 = vld [vmem:[%s287_s0] sm:$0xff] }
  0x14   :  { %179 = vmatprep.subr.mxu0 %v244_v0  ;;  %v155_v21 = vld [vmem:[%s289_s2] ss:$0 sm:$0xff] }
  0x15   :  { %180 = vmatpush3.msra.mxu0 %v44_v4  ;;  %v139_v26 = vld [vmem:[%s290_s3] sm:$0xff] }
  0x16   :  { %181 = vmatprep.subr.mxu0 %v244_v0 }
  0x17   :  { %182 = vmatpush3.msra.mxu0 %v43_v5 }
  0x18   :  { %183 = vmatprep.subr.mxu0 %v244_v0 }
  0x19   :  { %184 = vmatpush3.msra.mxu0 %v42_v6 }
  0x1a   :  { %185 = vmatprep.subr.mxu0 %v244_v0 }
  0x1b   :  { %186 = vmatpush3.msra.mxu0 %v41_v7 }
  0x1c   :  { %187 = vmatprep.subr.mxu0 %v244_v0 }
  0x1d   :  { %188 = vmatpush3.msra.mxu0 %v40_v8 }
  0x1e   :  { %189 = vmatprep.subr.mxu0 %v244_v0 }
  0x1f   :  { %190 = vmatpush3.msra.mxu0 %v39_v9 }
  0x20   :  { %191 = vmatprep.subr.mxu0 %v244_v0 }
  0x21   :  { %192 = vmatpush3.msra.mxu0 %v38_v10 }
  0x22   :  { %193 = vmatprep.subr.mxu0 %v244_v0 }
  0x23   :  { %194 = vmatpush3.msra.mxu0 %v37_v11 }
  0x24   :  { %195 = vmatprep.subr.mxu0 %v244_v0 }
  0x25   :  { %196 = vmatpush3.msra.mxu0 %v36_v12 }
  0x26   :  { %197 = vmatprep.subr.mxu0 %v244_v0 }
  0x27   :  { %198 = vmatpush3.msra.mxu0 %v35_v13 }
  0x28   :  { %199 = vmatprep.subr.mxu0 %v244_v0 }
  0x29   :  { %200 = vmatpush3.msra.mxu0 %v34_v14 }
  0x2a   :  { %201 = vmatprep.subr.mxu0 %v244_v0 }
  0x2b   :  { %202 = vmatpush3.msra.mxu0 %v33_v15 }
  0x2c   :  { %203 = vmatprep.subr.mxu0 %v244_v0 }
  0x2d   :  { %204 = vmatpush3.msra.mxu0 %v32_v16 }
  0x2e   :  { %206 = vmatmul.mubr.f32.vlgmr.msra.gmra.mxu0 %v31_v17 }
  0xee   :  { %v121_v22 = vpop.f32.mrf.mxu0 }
  0xef   :  { %v122_v23 = vadd.f32 %v155_v21, %v121_v22 }
  0xf0   :  { %v207_v24 = vpop.f32.mrf.mxu0 }
  0xf1   :  { %v128_v25 = vsel %vm127_vm1, %v122_v23, -1e+30 }
  0xf2   :  { %129 = vmax.xlane.f32.xlu0 %v128_v25 }
 0x108   :  { %141 = vperm.xlu0 %214, %v139_v26  }
 0x17b   :  { %v130_v27 = vpop.xlane.xlu0 %129 }
 0x17c   :  { %v131_v28 = vsub.f32 %v128_v25, %v130_v27 }
 0x17e   :  { %v132_v29 = vmul.f32 1.442695, %v131_v28 }
 0x180   :  { %215 = vpow2.f32 %v132_v29 }
 0x183   :  { %v142_v30 = vpop.permute.xlu0 %141 }
 0x184   :  { %vm143_vm2 = vcmp.eq.s32.totalorder %v126_v20, %v142_v30 }
 0x185   :  { %v144_v32 = vsel %vm143_vm2, %v128_v25, 0.0 }
 0x18d   :  { %v216_v31 = vpop.eup %215 }
 0x18e   :  { %134 = vadd.xlane.f32.xlu1 %v216_v31 }
 0x192   :  { %145 = vadd.xlane.f32.xlu1 %v144_v32 }
 0x217   :  { %v135_v33 = vpop.xlane.xlu1 %134 }
 0x218   :  { %217 = vlog2.f32 %v135_v33 }
 0x21b   :  { %v146_v37 = vpop.xlane.xlu1 %145 }
 0x225   :  { %v218_v34 = vpop.eup %217 }
 0x226   :  { %v137_v35 = vmul.f32 0.6931472, %v218_v34 }
 0x228   :  { %v138_v36 = vadd.f32 %v137_v35, %v130_v27 }
 0x22a   :  { %v147_v38 = vsub.f32 %v138_v36, %v146_v37 }
 0x22c   :  { %149 = vst.msk [vmem:[%s291_s4] sm:$0xff] %vm148_vm3, %v147_v38 }
 0x22d   :  { %154 = vsyncpa [#allocation3], 1 }

// kernel: tpu_custom_call.1
= control target key start
LH: loop header
LB: loop body
LE: loop exit
PB: predicated region body
PF: predicated region fallthrough
CT: control target
= control target key end

     0   :  { %9 = vsyncpa [#allocation3], 0  ;;  %s241_s15 = smov [#allocation2]   ;;  %s287_s0 = inlined_call_operand.vmem [shape: f32[8,128], index: 0, kind: input, shape index: {}]   ;;  %s288_s1 = inlined_call_operand.hbm [shape: f32[128,128], index: 1, kind: input, shape index: {}]   ;;  %s289_s2 = inlined_call_operand.vmem [shape: f32[1,128], index: 2, kind: input, shape index: {}]   ;;  %s290_s3 = inlined_call_operand.vmem [shape: s32[8,1], index: 3, kind: input, shape index: {}]   ;;  %s291_s4 = inlined_call_operand.vmem [shape: f32[8,1], index: 4, kind: output, shape index: {}]  }
   0x1   :  { %s17_s16 = sshll.u32 %s241_s15, 4  ;;  %s18_s16 = int_to_ptr.vmem [resolvable:$true] %s17_s16 }
   0x2   :  { %s227_s17 = scalar_lea.vmem %s18_s16, 2048  ;;  %p232_p1 = scmp.lt.s32.totalorder %s18_s16, %s18_s16 }
   0x3   :  { %p228_p0 = scmp.ne.s32.totalorder %s18_s16, %s227_s17  ;;  %p233_p2 = scmp.lt.s32.totalorder %s227_s17, %s227_s17 }
   0x5   :  { %p234_p3 = por %p233_p2, %p232_p1 }
   0x7   :  { %p235_p4 = pnand %p234_p3, %p228_p0 }
   0x9   :  { %238 = shalt.err (!%p235_p4)
}
   0xa   :  { %s242_s18 = smov 128   ;;  %s243_s19 = smov 8  }
   0xb   :  { %23 = dma.hbm_to_vmem [thread:$0]  %s288_s1, 2048, %s18_s16, [#allocation3], %s242_s18, %s242_s18, %s243_s19  }
   0xc   :  { %239 = dma.done.wait [#allocation3], 2048  }
   0xd   :  { %240 = vsyncadd [#allocation3], 4294965248  ;;  %v244_v0 = vmov 0.0   ;;  %vm245_vm0 = vmmov 0   ;;  %v47_v1 = vld [vmem:[#allocation2 + $0x78] sm:$0xff]  ;;  %v46_v2 = vld [vmem:[#allocation2 + $0x70] sm:$0xff]  ;;  %v125_v19 = vlaneseq }
   0xe   :  { %173 = vmatprep.subr.mxu0 %v244_v0  ;;  %205 = vmatprep.mubr.msk.f32.mxu0 %vm245_vm0, %v244_v0  ;;  %v45_v3 = vld [vmem:[#allocation2 + $0x68] sm:$0xff]  ;;  %v44_v4 = vld [vmem:[#allocation2 + $0x60] sm:$0xff]  ;;  %v43_v5 = vld [vmem:[#allocation2 + $0x58] sm:$0xff]  ;;  %v246_v18 = vmov 0   ;;  %vm148_vm3 = vcmask 7168  }
   0xf   :  { %174 = vmatpush3.msra.mxu0 %v47_v1  ;;  %v42_v6 = vld [vmem:[#allocation2 + $0x50] sm:$0xff]  ;;  %v41_v7 = vld [vmem:[#allocation2 + $0x48] sm:$0xff]  ;;  %v40_v8 = vld [vmem:[#allocation2 + $0x40] sm:$0xff]  ;;  %214 = vset.pattern.permute.xlu0 %v246_v18  ;;  %v126_v20 = vand.u32 127, %v125_v19 }
  0x10   :  { %175 = vmatprep.subr.mxu0 %v244_v0  ;;  %v39_v9 = vld [vmem:[#allocation2 + $0x38] sm:$0xff]  ;;  %v38_v10 = vld [vmem:[#allocation2 + $0x30] sm:$0xff]  ;;  %v37_v11 = vld [vmem:[#allocation2 + $0x28] sm:$0xff] }
  0x11   :  { %176 = vmatpush3.msra.mxu0 %v46_v2  ;;  %v36_v12 = vld [vmem:[#allocation2 + $0x20] sm:$0xff]  ;;  %v35_v13 = vld [vmem:[#allocation2 + $0x18] sm:$0xff]  ;;  %v34_v14 = vld [vmem:[#allocation2 + $0x10] sm:$0xff]  ;;  %vm127_vm1 = vcmp.lt.s32.totalorder %v126_v20, 32 }
  0x12   :  { %177 = vmatprep.subr.mxu0 %v244_v0  ;;  %v33_v15 = vld [vmem:[#allocation2 + $0x8] sm:$0xff]  ;;  %v32_v16 = vld [vmem:[#allocation2] sm:$0xff] }
  0x13   :  { %178 = vmatpush3.msra.mxu0 %v45_v3  ;;  %v31_v17 = vld [vmem:[%s287_s0] sm:$0xff] }
  0x14   :  { %179 = vmatprep.subr.mxu0 %v244_v0  ;;  %v155_v21 = vld [vmem:[%s289_s2] ss:$0 sm:$0xff] }
  0x15   :  { %180 = vmatpush3.msra.mxu0 %v44_v4  ;;  %v139_v26 = vld [vmem:[%s290_s3] sm:$0xff] }
  0x16   :  { %181 = vmatprep.subr.mxu0 %v244_v0 }
  0x17   :  { %182 = vmatpush3.msra.mxu0 %v43_v5 }
  0x18   :  { %183 = vmatprep.subr.mxu0 %v244_v0 }
  0x19   :  { %184 = vmatpush3.msra.mxu0 %v42_v6 }
  0x1a   :  { %185 = vmatprep.subr.mxu0 %v244_v0 }
  0x1b   :  { %186 = vmatpush3.msra.mxu0 %v41_v7 }
  0x1c   :  { %187 = vmatprep.subr.mxu0 %v244_v0 }
  0x1d   :  { %188 = vmatpush3.msra.mxu0 %v40_v8 }
  0x1e   :  { %189 = vmatprep.subr.mxu0 %v244_v0 }
  0x1f   :  { %190 = vmatpush3.msra.mxu0 %v39_v9 }
  0x20   :  { %191 = vmatprep.subr.mxu0 %v244_v0 }
  0x21   :  { %192 = vmatpush3.msra.mxu0 %v38_v10 }
  0x22   :  { %193 = vmatprep.subr.mxu0 %v244_v0 }
  0x23   :  { %194 = vmatpush3.msra.mxu0 %v37_v11 }
  0x24   :  { %195 = vmatprep.subr.mxu0 %v244_v0 }
  0x25   :  { %196 = vmatpush3.msra.mxu0 %v36_v12 }
  0x26   :  { %197 = vmatprep.subr.mxu0 %v244_v0 }
  0x27   :  { %198 = vmatpush3.msra.mxu0 %v35_v13 }
  0x28   :  { %199 = vmatprep.subr.mxu0 %v244_v0 }
  0x29   :  { %200 = vmatpush3.msra.mxu0 %v34_v14 }
  0x2a   :  { %201 = vmatprep.subr.mxu0 %v244_v0 }
  0x2b   :  { %202 = vmatpush3.msra.mxu0 %v33_v15 }
  0x2c   :  { %203 = vmatprep.subr.mxu0 %v244_v0 }
  0x2d   :  { %204 = vmatpush3.msra.mxu0 %v32_v16 }
  0x2e   :  { %206 = vmatmul.mubr.f32.vlgmr.msra.gmra.mxu0 %v31_v17 }
  0xee   :  { %v121_v22 = vpop.f32.mrf.mxu0 }
  0xef   :  { %v122_v23 = vadd.f32 %v155_v21, %v121_v22 }
  0xf0   :  { %v207_v24 = vpop.f32.mrf.mxu0 }
  0xf1   :  { %v128_v25 = vsel %vm127_vm1, %v122_v23, -1e+30 }
  0xf2   :  { %129 = vmax.xlane.f32.xlu0 %v128_v25 }
 0x108   :  { %141 = vperm.xlu0 %214, %v139_v26  }
 0x17b   :  { %v130_v27 = vpop.xlane.xlu0 %129 }
 0x17c   :  { %v131_v28 = vsub.f32 %v128_v25, %v130_v27 }
 0x17e   :  { %v132_v29 = vmul.f32 1.442695, %v131_v28 }
 0x180   :  { %215 = vpow2.f32 %v132_v29 }
 0x183   :  { %v142_v30 = vpop.permute.xlu0 %141 }
 0x184   :  { %vm143_vm2 = vcmp.eq.s32.totalorder %v126_v20, %v142_v30 }
 0x185   :  { %v144_v32 = vsel %vm143_vm2, %v128_v25, 0.0 }
 0x18d   :  { %v216_v31 = vpop.eup %215 }
 0x18e   :  { %134 = vadd.xlane.f32.xlu1 %v216_v31 }
 0x192   :  { %145 = vadd.xlane.f32.xlu1 %v144_v32 }
 0x217   :  { %v135_v33 = vpop.xlane.xlu1 %134 }
 0x218   :  { %217 = vlog2.f32 %v135_v33 }
 0x21b   :  { %v146_v37 = vpop.xlane.xlu1 %145 }
 0x225   :  { %v218_v34 = vpop.eup %217 }
 0x226   :  { %v137_v35 = vmul.f32 0.6931472, %v218_v34 }
 0x228   :  { %v138_v36 = vadd.f32 %v137_v35, %v130_v27 }
 0x22a   :  { %v147_v38 = vsub.f32 %v138_v36, %v146_v37 }
 0x22c   :  { %149 = vst.msk [vmem:[%s291_s4] sm:$0xff] %vm148_vm3, %v147_v38 }
 0x22d   :  { %154 = vsyncpa [#allocation3], 1 }

</bundles_post_ra>
